<compile_context>
chip_gen: v5e
topology: v5e:2x2
jax: 0.10.0
libtpu: 0.0.40
codegen_flags: <defaults>
</compile_context>

<pallas_src>
import math

import jax
import jax.numpy as jnp
from jax.experimental import pallas as pl
from jax.experimental.pallas import tpu as pltpu


def _time_embedding_kernel(t_ref, freqs_ref, w1_ref, b1_ref, w2_ref, b2_ref,
                           o_ref, h_ref):
    # Grid = (B // tm, D // tn); axis 0 = batch tiles ("parallel"),
    # axis 1 = output-N tiles ("arbitrary", sequential sweep).
    #
    # t_ref:     (tm, 1)  f32        freqs_ref: (1, H2) f32
    # w1_ref:    (C, D)   f32/bf16   b1_ref:    (1, D)  f32
    # w2_ref:    (D, tn)  f32/bf16   b2_ref:    (1, tn) f32
    # o_ref:     (tm, tn) f32        h_ref:     (tm, D) scratch, matmul dtype

    @pl.when(pl.program_id(1) == 0)
    def _():
        # lin1 (sinusoidal embedding -> linear -> SiLU) computed ONCE per batch
        # tile into persistent VMEM scratch; lin2 N-tiles below only read it.
        t = t_ref[...]                          # (tm, 1)
        freqs = freqs_ref[...]                  # (1, H2)
        phase = t * freqs                       # (tm, H2) broadcast outer product (VPU)

        h2 = freqs_ref.shape[1]
        dot_dtype = w1_ref.dtype                # bf16 or f32 MXU operands

        sin_p = jnp.sin(phase).astype(dot_dtype)
        cos_p = jnp.cos(phase).astype(dot_dtype)

        # lin1 without materializing concat([sin, cos]) along the lane axis:
        # static Ref slices of w1 are free views (H2 alignment asserted in the
        # wrapper), f32 accumulation on the MXU.
        h = (jnp.dot(sin_p, w1_ref[:h2, :], preferred_element_type=jnp.float32)
             + jnp.dot(cos_p, w1_ref[h2:, :], preferred_element_type=jnp.float32)
             + b1_ref[...])                     # (tm, D) f32
        h = h * jax.nn.sigmoid(h)               # SiLU, f32 VPU/EUP
        h_ref[...] = h.astype(h_ref.dtype)

    # lin2 for this (batch, output-N) tile; f32 accumulation on the MXU.
    out = jnp.dot(h_ref[...], w2_ref[...], preferred_element_type=jnp.float32)
    o_ref[...] = (out + b2_ref[...]).astype(o_ref.dtype)


def _vmem_capacity_bytes(default=64 << 20):
    """Per-core VMEM capacity; conservative default if the query fails."""
    try:
        return int(pltpu.get_tpu_info().vmem_capacity_bytes)
    except Exception:  # interpret mode / non-TPU tracing
        return default


def _pick_n_tile(D, wbytes, vmem_cap):
    """Largest output-N tile (multiple of 128, divides D) within a
    dtype- and generation-aware cap."""
    if D % 128 != 0:
        return D  # single full-width block (block == full dim is always legal)
    if vmem_cap >= 96 << 20:                 # v5e / v6e: 128 MiB VMEM
        max_tn = 1024 if wbytes <= 2 else 512
    else:                                    # v7x-class: 64 MiB VMEM
        max_tn = 512 if wbytes <= 2 else 256
    for cand in range(min(max_tn, D), 127, -128):
        if D % cand == 0:
            return cand
    return D


def _pick_m_tile(B):
    if B <= 256:
        return B
    for cand in range(256, 7, -8):
        if B % cand == 0:
            return cand
    return B


def _vmem_limit(tm, H2, C, D, tn, wbytes, vmem_cap, single_buffered_resident):
    res_mult = 1 if single_buffered_resident else 2
    resident = res_mult * (H2 * 4 + C * D * wbytes + D * 4)   # freqs, w1, b1
    resident += 2 * tm * 4                                    # t (double-buffered, tiny)
    scratch = tm * D * wbytes                                 # persistent h
    streamed = 2 * (D * tn * wbytes + tn * 4 + tm * tn * 4)   # w2, b2, out (double-buffered)
    limit = int(1.5 * (resident + scratch + streamed)) + (2 << 20)
    limit = max(limit, 8 << 20)
    limit = min(limit, vmem_cap - (8 << 20))                  # generation-aware headroom
    return int(limit)


def time_embedding_forward(t, freqs, w1, b1, w2, b2, *,
                           weight_dtype=jnp.bfloat16,
                           single_buffer_resident=True):
    """Pallas forward.

    weight_dtype: dtype of the MXU weight operands (default bf16, f32 acc);
                  pass None to keep the weights' original dtype (exact-f32 path).
    """
    B = t.shape[0]
    C, D = w1.shape
    H2 = freqs.shape[1]
    assert w2.shape == (D, D) and b1.shape == (1, D) and b2.shape == (1, D)
    assert 2 * H2 == C, "freqs must have n_channels // 2 entries"

    if weight_dtype is not None:
        w1 = w1.astype(weight_dtype)
        w2 = w2.astype(weight_dtype)
    wbytes = jnp.dtype(w1.dtype).itemsize

    # The in-kernel w1_ref[:H2]/w1_ref[H2:] slices are only free (no relayout
    # copy per grid step) when H2 is sublane-tile aligned for the weight dtype.
    sublane = {4: 8, 2: 16, 1: 32}.get(wbytes, 8)
    assert H2 % sublane == 0, (
        f"n_channels//2 = {H2} must be a multiple of {sublane} for "
        f"{jnp.dtype(w1.dtype).name} weights (free w1 row slices)")

    t2d = t.astype(jnp.float32).reshape(B, 1)

    vmem_cap = _vmem_capacity_bytes()
    tn = _pick_n_tile(D, wbytes, vmem_cap)
    tm = _pick_m_tile(B)
    grid = (B // tm, D // tn)

    # Honest advisory cost so XLA can overlap this small call with neighbors.
    cost = pl.CostEstimate(
        flops=int(2 * B * D * (C + D)),
        transcendentals=int(B * (2 * H2 + D)),        # sin, cos, sigmoid
        bytes_accessed=int((C * D + D * D) * wbytes + (B + H2 + 2 * D) * 4 + B * D * 4),
    )

    def build(buffered_resident):
        def resident_spec(shape):
            if buffered_resident:
                # Constant index map -> fetched once; no need for the default
                # second pipeline buffer (saves a full w1 copy of VMEM).
                return pl.BlockSpec(shape, lambda i, j: (0, 0),
                                    pipeline_mode=pl.Buffered(1))
            return pl.BlockSpec(shape, lambda i, j: (0, 0))

        grid_spec = pltpu.PrefetchScalarGridSpec(
            num_scalar_prefetch=0,
            grid=grid,
            in_specs=[
                pl.BlockSpec((tm, 1), lambda i, j: (i, 0)),    # t   (per batch tile)
                resident_spec((1, H2)),                        # freqs (resident)
                resident_spec((C, D)),                         # w1    (resident)
                resident_spec((1, D)),                         # b1    (resident)
                pl.BlockSpec((D, tn), lambda i, j: (0, j)),    # w2    (streamed N-tiles)
                pl.BlockSpec((1, tn), lambda i, j: (0, j)),    # b2    (streamed)
            ],
            out_specs=pl.BlockSpec((tm, tn), lambda i, j: (i, j)),
            scratch_shapes=[pltpu.VMEM((tm, D), w2.dtype)],    # persistent h
        )
        return pl.pallas_call(
            _time_embedding_kernel,
            out_shape=jax.ShapeDtypeStruct((B, D), jnp.float32),
            grid_spec=grid_spec,
            compiler_params=pltpu.CompilerParams(
                # batch axis megacore-shardable; N axis must stay sequential
                # because lin1 is computed once into scratch at j == 0.
                dimension_semantics=("parallel", "arbitrary"),
                vmem_limit_bytes=_vmem_limit(tm, H2, C, D, tn, wbytes,
                                             vmem_cap, buffered_resident),
            ),
            cost_estimate=cost,
        )(t2d, freqs, w1, b1, w2, b2)

    if single_buffer_resident:
        try:
            return build(True)
        except Exception:
            # Older/variant JAX builds without BlockSpec pipeline_mode support:
            # fall back to default double-buffered residents (correctness identical).
            pass
    return build(False)


def ddpm_uniform_init(key, shape_out_in, scale=1.0):
    """default_init / variance_scaling(scale, 'fan_avg', 'uniform') from DDPM.

    shape_out_in follows PyTorch nn.Linear weight convention: (out, in).
    Returns the weight TRANSPOSED to (in, out) for use as x @ W.
    """
    out_dim, in_dim = shape_out_in
    fan_in, fan_out = in_dim, out_dim
    denominator = (fan_in + fan_out) / 2.0
    variance = scale / denominator
    bound = math.sqrt(3.0 * variance)
    w = jax.random.uniform(key, (out_dim, in_dim), jnp.float32, minval=-bound, maxval=bound)
    return w.T  # (in, out)


def make_params(key, n_channels):
    d = n_channels * 4
    k1, k2 = jax.random.split(key)
    w1 = ddpm_uniform_init(k1, (d, n_channels))   # (C, D)
    b1 = jnp.zeros((1, d), jnp.float32)
    w2 = ddpm_uniform_init(k2, (d, d))            # (D, D)
    b2 = jnp.zeros((1, d), jnp.float32)
    return w1, b1, w2, b2


def make_freqs(n_channels, max_time=10000):
    half_dim = n_channels // 2
    # guard half_dim == 1 (n_channels == 2) against divide-by-zero
    emb = math.log(max_time) / max(half_dim - 1, 1)
    freqs = jnp.exp(jnp.arange(half_dim, dtype=jnp.float32) * -emb)
    return freqs.reshape(1, half_dim)


def reference_forward(t, freqs, w1, b1, w2, b2):
    """Plain-JAX reference mirroring the PyTorch module (same operand dtypes)."""
    phase = t.astype(jnp.float32)[:, None] * freqs[0][None, :]
    emb = jnp.concatenate([jnp.sin(phase), jnp.cos(phase)], axis=1).astype(w1.dtype)
    h = jnp.dot(emb, w1, preferred_element_type=jnp.float32) + b1
    h = h * jax.nn.sigmoid(h)
    return jnp.dot(h.astype(w2.dtype), w2, preferred_element_type=jnp.float32) + b2


if __name__ == "__main__":
    key = jax.random.PRNGKey(0)
    n_channels = 32
    max_time = 10000
    batch = 8  # small demo batch; the kernel tiles any batch (parallel M axis)

    k_params, k_t = jax.random.split(key)
    w1, b1, w2, b2 = make_params(k_params, n_channels)
    freqs = make_freqs(n_channels, max_time)

    # deterministic example time steps
    t = jax.random.randint(k_t, (batch,), 0, max_time).astype(jnp.float32)

    # --- f32-weight path: exactness check against the reference ---
    out_f32 = jax.block_until_ready(
        time_embedding_forward(t, freqs, w1, b1, w2, b2, weight_dtype=None))
    ref_f32 = reference_forward(t, freqs, w1, b1, w2, b2)
    assert out_f32.shape == (batch, n_channels * 4)
    assert jnp.allclose(out_f32, ref_f32, atol=1e-4, rtol=1e-4)

    # --- default path: bf16 MXU weights, f32 accumulation (halves weight DMA) ---
    out_bf16 = jax.block_until_ready(time_embedding_forward(t, freqs, w1, b1, w2, b2))
    ref_bf16 = reference_forward(t, freqs,
                                 w1.astype(jnp.bfloat16), b1,
                                 w2.astype(jnp.bfloat16), b2)
    assert out_bf16.shape == (batch, n_channels * 4)
    assert jnp.allclose(out_bf16, ref_bf16, atol=5e-2, rtol=5e-2)

    print("KERNEL_OK")
</pallas_src>

<mosaic_0001>
module attributes {stable_mosaic.version = 11 : i64} {
  func.func @_time_embedding_kernel(%arg0: i32, %arg1: i32, %arg2: memref<8x1xf32, #tpu.memory_space<vmem>>, %arg3: memref<1x16xf32, #tpu.memory_space<vmem>>, %arg4: memref<32x128xf32, #tpu.memory_space<vmem>>, %arg5: memref<1x128xf32, #tpu.memory_space<vmem>>, %arg6: memref<128x128xf32, #tpu.memory_space<vmem>>, %arg7: memref<1x128xf32, #tpu.memory_space<vmem>>, %arg8: memref<8x128xf32, #tpu.memory_space<vmem>>, %arg9: memref<8x128xf32, #tpu.memory_space<vmem>>) attributes {dimension_semantics = [#tpu.dimension_semantics<parallel>, #tpu.dimension_semantics<arbitrary>], iteration_bounds = array<i64: 1, 1>, scalar_prefetch = 0 : i64, scratch_operands = 1 : i64, tpu.core_type = #tpu.core_type<tc>, window_params = [{transform_indices = @transform_0, window_bounds = array<i64: 8, 1>}, {pipeline_mode = #tpu.pipeline_mode<synchronous>, transform_indices = @transform_1, window_bounds = array<i64: 1, 16>}, {pipeline_mode = #tpu.pipeline_mode<synchronous>, transform_indices = @transform_2, window_bounds = array<i64: 32, 128>}, {pipeline_mode = #tpu.pipeline_mode<synchronous>, transform_indices = @transform_3, window_bounds = array<i64: 1, 128>}, {transform_indices = @transform_4, window_bounds = array<i64: 128, 128>}, {transform_indices = @transform_5, window_bounds = array<i64: 1, 128>}, {transform_indices = @transform_6, window_bounds = array<i64: 8, 128>}]} {
    %c0_i32 = arith.constant 0 : i32
    %0 = arith.cmpi eq, %arg1, %c0_i32 : i32
    %1 = arith.extui %0 : i1 to i32
    %c0_i32_0 = arith.constant 0 : i32
    %2 = arith.cmpi ne, %1, %c0_i32_0 : i32
    scf.if %2 {
      %c0_8 = arith.constant 0 : index
      %c0_9 = arith.constant 0 : index
      %10 = vector.load %arg2[%c0_8, %c0_9] : memref<8x1xf32, #tpu.memory_space<vmem>>, vector<8x1xf32>
      %c0_10 = arith.constant 0 : index
      %c0_11 = arith.constant 0 : index
      %11 = vector.load %arg3[%c0_10, %c0_11] : memref<1x16xf32, #tpu.memory_space<vmem>>, vector<1x16xf32>
      %12 = vector.broadcast %10 : vector<8x1xf32> to vector<8x16xf32>
      %13 = vector.broadcast %11 : vector<1x16xf32> to vector<8x16xf32>
      %14 = arith.mulf %12, %13 : vector<8x16xf32>
      %15 = math.sin %14 : vector<8x16xf32>
      %16 = math.cos %14 : vector<8x16xf32>
      %c0_12 = arith.constant 0 : index
      %c0_13 = arith.constant 0 : index
      %17 = vector.load %arg4[%c0_12, %c0_13] : memref<32x128xf32, #tpu.memory_space<vmem>>, vector<16x128xf32>
      %cst_14 = arith.constant dense<0.000000e+00> : vector<8x128xf32>
      %18 = tpu.matmul %15, %17, %cst_14 {dimension_numbers = #tpu.dot_dimension_numbers<[1], [0], [0], [1], [0, 0, 1, 1], [], []>} : vector<8x16xf32>, vector<16x128xf32>, vector<8x128xf32> -> vector<8x128xf32>
      %c16 = arith.constant 16 : index
      %c0_15 = arith.constant 0 : index
      %19 = vector.load %arg4[%c16, %c0_15] : memref<32x128xf32, #tpu.memory_space<vmem>>, vector<16x128xf32>
      %cst_16 = arith.constant dense<0.000000e+00> : vector<8x128xf32>
      %20 = tpu.matmul %16, %19, %cst_16 {dimension_numbers = #tpu.dot_dimension_numbers<[1], [0], [0], [1], [0, 0, 1, 1], [], []>} : vector<8x16xf32>, vector<16x128xf32>, vector<8x128xf32> -> vector<8x128xf32>
      %21 = arith.addf %18, %20 : vector<8x128xf32>
      %c0_17 = arith.constant 0 : index
      %c0_18 = arith.constant 0 : index
      %22 = vector.load %arg5[%c0_17, %c0_18] : memref<1x128xf32, #tpu.memory_space<vmem>>, vector<1x128xf32>
      %23 = vector.broadcast %22 : vector<1x128xf32> to vector<8x128xf32>
      %24 = arith.addf %21, %23 : vector<8x128xf32>
      %25 = arith.negf %24 : vector<8x128xf32>
      %26 = math.exp %25 : vector<8x128xf32>
      %cst_19 = arith.constant 1.000000e+00 : f32
      %27 = vector.broadcast %cst_19 : f32 to vector<8x128xf32>
      %28 = arith.addf %27, %26 : vector<8x128xf32>
      %29 = arith.divf %27, %28 : vector<8x128xf32>
      %30 = arith.mulf %24, %29 : vector<8x128xf32>
      %c0_20 = arith.constant 0 : index
      %c0_21 = arith.constant 0 : index
      %31 = vector.load %arg9[%c0_20, %c0_21] : memref<8x128xf32, #tpu.memory_space<vmem>>, vector<8x128xf32>
      tpu.vector_store %arg9[%c0_20, %c0_21], %30 {strides = array<i32>} : memref<8x128xf32, #tpu.memory_space<vmem>>, vector<8x128xf32>,
    } else {
    }
    %c0 = arith.constant 0 : index
    %c0_1 = arith.constant 0 : index
    %3 = vector.load %arg9[%c0, %c0_1] : memref<8x128xf32, #tpu.memory_space<vmem>>, vector<8x128xf32>
    %c0_2 = arith.constant 0 : index
    %c0_3 = arith.constant 0 : index
    %4 = vector.load %arg6[%c0_2, %c0_3] : memref<128x128xf32, #tpu.memory_space<vmem>>, vector<128x128xf32>
    %cst = arith.constant dense<0.000000e+00> : vector<8x128xf32>
    %5 = tpu.matmul %3, %4, %cst {dimension_numbers = #tpu.dot_dimension_numbers<[1], [0], [0], [1], [0, 0, 1, 1], [], []>} : vector<8x128xf32>, vector<128x128xf32>, vector<8x128xf32> -> vector<8x128xf32>
    %c0_4 = arith.constant 0 : index
    %c0_5 = arith.constant 0 : index
    %6 = vector.load %arg7[%c0_4, %c0_5] : memref<1x128xf32, #tpu.memory_space<vmem>>, vector<1x128xf32>
    %7 = vector.broadcast %6 : vector<1x128xf32> to vector<8x128xf32>
    %8 = arith.addf %5, %7 : vector<8x128xf32>
    %c0_6 = arith.constant 0 : index
    %c0_7 = arith.constant 0 : index
    %9 = vector.load %arg8[%c0_6, %c0_7] : memref<8x128xf32, #tpu.memory_space<vmem>>, vector<8x128xf32>
    tpu.vector_store %arg8[%c0_6, %c0_7], %8 {strides = array<i32>} : memref<8x128xf32, #tpu.memory_space<vmem>>, vector<8x128xf32>,
    return
  }
  func.func @transform_0(%arg0: i32, %arg1: i32) -> (i32, i32) {
    %c0_i32 = arith.constant 0 : i32
    %c0_i32_0 = arith.constant 0 : i32
    return %arg0, %c0_i32 : i32, i32
  }
  func.func @transform_1(%arg0: i32, %arg1: i32) -> (i32, i32) {
    %c0_i32 = arith.constant 0 : i32
    %c0_i32_0 = arith.constant 0 : i32
    %c0_i32_1 = arith.constant 0 : i32
    return %c0_i32, %c0_i32_0 : i32, i32
  }
  func.func @transform_2(%arg0: i32, %arg1: i32) -> (i32, i32) {
    %c0_i32 = arith.constant 0 : i32
    %c0_i32_0 = arith.constant 0 : i32
    %c0_i32_1 = arith.constant 0 : i32
    return %c0_i32, %c0_i32_0 : i32, i32
  }
  func.func @transform_3(%arg0: i32, %arg1: i32) -> (i32, i32) {
    %c0_i32 = arith.constant 0 : i32
    %c0_i32_0 = arith.constant 0 : i32
    %c0_i32_1 = arith.constant 0 : i32
    return %c0_i32, %c0_i32_0 : i32, i32
  }
  func.func @transform_4(%arg0: i32, %arg1: i32) -> (i32, i32) {
    %c0_i32 = arith.constant 0 : i32
    %c0_i32_0 = arith.constant 0 : i32
    return %c0_i32, %arg1 : i32, i32
  }
  func.func @transform_5(%arg0: i32, %arg1: i32) -> (i32, i32) {
    %c0_i32 = arith.constant 0 : i32
    %c0_i32_0 = arith.constant 0 : i32
    return %c0_i32, %arg1 : i32, i32
  }
  func.func @transform_6(%arg0: i32, %arg1: i32) -> (i32, i32) {
    %c0_i32 = arith.constant 0 : i32
    return %arg0, %arg1 : i32, i32
  }
}

module attributes {stable_mosaic.version = 11 : i64} {
  func.func @_time_embedding_kernel(%arg0: i32, %arg1: i32, %arg2: memref<8x1xf32, #tpu.memory_space<vmem>>, %arg3: memref<1x16xf32, #tpu.memory_space<vmem>>, %arg4: memref<32x128xf32, #tpu.memory_space<vmem>>, %arg5: memref<1x128xf32, #tpu.memory_space<vmem>>, %arg6: memref<128x128xf32, #tpu.memory_space<vmem>>, %arg7: memref<1x128xf32, #tpu.memory_space<vmem>>, %arg8: memref<8x128xf32, #tpu.memory_space<vmem>>, %arg9: memref<8x128xf32, #tpu.memory_space<vmem>>) attributes {dimension_semantics = [#tpu.dimension_semantics<parallel>, #tpu.dimension_semantics<arbitrary>], iteration_bounds = array<i64: 1, 1>, scalar_prefetch = 0 : i64, scratch_operands = 1 : i64, tpu.core_type = #tpu.core_type<tc>, window_params = [{transform_indices = @transform_0, window_bounds = array<i64: 8, 1>}, {pipeline_mode = #tpu.pipeline_mode<synchronous>, transform_indices = @transform_1, window_bounds = array<i64: 1, 16>}, {pipeline_mode = #tpu.pipeline_mode<synchronous>, transform_indices = @transform_2, window_bounds = array<i64: 32, 128>}, {pipeline_mode = #tpu.pipeline_mode<synchronous>, transform_indices = @transform_3, window_bounds = array<i64: 1, 128>}, {transform_indices = @transform_4, window_bounds = array<i64: 128, 128>}, {transform_indices = @transform_5, window_bounds = array<i64: 1, 128>}, {transform_indices = @transform_6, window_bounds = array<i64: 8, 128>}]} {
    %c0_i32 = arith.constant 0 : i32
    %0 = arith.cmpi eq, %arg1, %c0_i32 : i32
    %1 = arith.extui %0 : i1 to i32
    %c0_i32_0 = arith.constant 0 : i32
    %2 = arith.cmpi ne, %1, %c0_i32_0 : i32
    scf.if %2 {
      %c0_8 = arith.constant 0 : index
      %c0_9 = arith.constant 0 : index
      %10 = vector.load %arg2[%c0_8, %c0_9] : memref<8x1xf32, #tpu.memory_space<vmem>>, vector<8x1xf32>
      %c0_10 = arith.constant 0 : index
      %c0_11 = arith.constant 0 : index
      %11 = vector.load %arg3[%c0_10, %c0_11] : memref<1x16xf32, #tpu.memory_space<vmem>>, vector<1x16xf32>
      %12 = vector.broadcast %10 : vector<8x1xf32> to vector<8x16xf32>
      %13 = vector.broadcast %11 : vector<1x16xf32> to vector<8x16xf32>
      %14 = arith.mulf %12, %13 : vector<8x16xf32>
      %15 = math.sin %14 : vector<8x16xf32>
      %16 = math.cos %14 : vector<8x16xf32>
      %c0_12 = arith.constant 0 : index
      %c0_13 = arith.constant 0 : index
      %17 = vector.load %arg4[%c0_12, %c0_13] : memref<32x128xf32, #tpu.memory_space<vmem>>, vector<16x128xf32>
      %cst_14 = arith.constant dense<0.000000e+00> : vector<8x128xf32>
      %18 = tpu.matmul %15, %17, %cst_14 {dimension_numbers = #tpu.dot_dimension_numbers<[1], [0], [0], [1], [0, 0, 1, 1], [], []>} : vector<8x16xf32>, vector<16x128xf32>, vector<8x128xf32> -> vector<8x128xf32>
      %c16 = arith.constant 16 : index
      %c0_15 = arith.constant 0 : index
      %19 = vector.load %arg4[%c16, %c0_15] : memref<32x128xf32, #tpu.memory_space<vmem>>, vector<16x128xf32>
      %cst_16 = arith.constant dense<0.000000e+00> : vector<8x128xf32>
      %20 = tpu.matmul %16, %19, %cst_16 {dimension_numbers = #tpu.dot_dimension_numbers<[1], [0], [0], [1], [0, 0, 1, 1], [], []>} : vector<8x16xf32>, vector<16x128xf32>, vector<8x128xf32> -> vector<8x128xf32>
      %21 = arith.addf %18, %20 : vector<8x128xf32>
      %c0_17 = arith.constant 0 : index
      %c0_18 = arith.constant 0 : index
      %22 = vector.load %arg5[%c0_17, %c0_18] : memref<1x128xf32, #tpu.memory_space<vmem>>, vector<1x128xf32>
      %23 = vector.broadcast %22 : vector<1x128xf32> to vector<8x128xf32>
      %24 = arith.addf %21, %23 : vector<8x128xf32>
      %25 = arith.negf %24 : vector<8x128xf32>
      %26 = math.exp %25 : vector<8x128xf32>
      %cst_19 = arith.constant 1.000000e+00 : f32
      %27 = vector.broadcast %cst_19 : f32 to vector<8x128xf32>
      %28 = arith.addf %27, %26 : vector<8x128xf32>
      %29 = arith.divf %27, %28 : vector<8x128xf32>
      %30 = arith.mulf %24, %29 : vector<8x128xf32>
      %c0_20 = arith.constant 0 : index
      %c0_21 = arith.constant 0 : index
      %31 = vector.load %arg9[%c0_20, %c0_21] : memref<8x128xf32, #tpu.memory_space<vmem>>, vector<8x128xf32>
      tpu.vector_store %arg9[%c0_20, %c0_21], %30 {strides = array<i32>} : memref<8x128xf32, #tpu.memory_space<vmem>>, vector<8x128xf32>,
    } else {
    }
    %c0 = arith.constant 0 : index
    %c0_1 = arith.constant 0 : index
    %3 = vector.load %arg9[%c0, %c0_1] : memref<8x128xf32, #tpu.memory_space<vmem>>, vector<8x128xf32>
    %c0_2 = arith.constant 0 : index
    %c0_3 = arith.constant 0 : index
    %4 = vector.load %arg6[%c0_2, %c0_3] : memref<128x128xf32, #tpu.memory_space<vmem>>, vector<128x128xf32>
    %cst = arith.constant dense<0.000000e+00> : vector<8x128xf32>
    %5 = tpu.matmul %3, %4, %cst {dimension_numbers = #tpu.dot_dimension_numbers<[1], [0], [0], [1], [0, 0, 1, 1], [], []>} : vector<8x128xf32>, vector<128x128xf32>, vector<8x128xf32> -> vector<8x128xf32>
    %c0_4 = arith.constant 0 : index
    %c0_5 = arith.constant 0 : index
    %6 = vector.load %arg7[%c0_4, %c0_5] : memref<1x128xf32, #tpu.memory_space<vmem>>, vector<1x128xf32>
    %7 = vector.broadcast %6 : vector<1x128xf32> to vector<8x128xf32>
    %8 = arith.addf %5, %7 : vector<8x128xf32>
    %c0_6 = arith.constant 0 : index
    %c0_7 = arith.constant 0 : index
    %9 = vector.load %arg8[%c0_6, %c0_7] : memref<8x128xf32, #tpu.memory_space<vmem>>, vector<8x128xf32>
    tpu.vector_store %arg8[%c0_6, %c0_7], %8 {strides = array<i32>} : memref<8x128xf32, #tpu.memory_space<vmem>>, vector<8x128xf32>,
    return
  }
  func.func @transform_0(%arg0: i32, %arg1: i32) -> (i32, i32) {
    %c0_i32 = arith.constant 0 : i32
    %c0_i32_0 = arith.constant 0 : i32
    return %arg0, %c0_i32 : i32, i32
  }
  func.func @transform_1(%arg0: i32, %arg1: i32) -> (i32, i32) {
    %c0_i32 = arith.constant 0 : i32
    %c0_i32_0 = arith.constant 0 : i32
    %c0_i32_1 = arith.constant 0 : i32
    return %c0_i32, %c0_i32_0 : i32, i32
  }
  func.func @transform_2(%arg0: i32, %arg1: i32) -> (i32, i32) {
    %c0_i32 = arith.constant 0 : i32
    %c0_i32_0 = arith.constant 0 : i32
    %c0_i32_1 = arith.constant 0 : i32
    return %c0_i32, %c0_i32_0 : i32, i32
  }
  func.func @transform_3(%arg0: i32, %arg1: i32) -> (i32, i32) {
    %c0_i32 = arith.constant 0 : i32
    %c0_i32_0 = arith.constant 0 : i32
    %c0_i32_1 = arith.constant 0 : i32
    return %c0_i32, %c0_i32_0 : i32, i32
  }
  func.func @transform_4(%arg0: i32, %arg1: i32) -> (i32, i32) {
    %c0_i32 = arith.constant 0 : i32
    %c0_i32_0 = arith.constant 0 : i32
    return %c0_i32, %arg1 : i32, i32
  }
  func.func @transform_5(%arg0: i32, %arg1: i32) -> (i32, i32) {
    %c0_i32 = arith.constant 0 : i32
    %c0_i32_0 = arith.constant 0 : i32
    return %c0_i32, %arg1 : i32, i32
  }
  func.func @transform_6(%arg0: i32, %arg1: i32) -> (i32, i32) {
    %c0_i32 = arith.constant 0 : i32
    return %arg0, %arg1 : i32, i32
  }
}

</mosaic_0001>

<bundles_post_ra>
// kernel: tpu_custom_call.1
= control target key start
LH: loop header
LB: loop body
LE: loop exit
PB: predicated region body
PF: predicated region fallthrough
CT: control target
= control target key end

     0   :  { %11 = vsyncpa [#allocation4], 0  ;;  %s743_s0 = inlined_call_operand.vmem [shape: f32[8,1], index: 0, kind: input, shape index: {}]   ;;  %s744_s1 = inlined_call_operand.vmem [shape: f32[1,16], index: 1, kind: input, shape index: {}]   ;;  %s745_s2 = inlined_call_operand.hbm [shape: f32[32,128], index: 2, kind: input, shape index: {}]   ;;  %s746_s3 = inlined_call_operand.vmem [shape: f32[1,128], index: 3, kind: input, shape index: {}]   ;;  %s747_s4 = inlined_call_operand.hbm [shape: f32[128,128], index: 4, kind: input, shape index: {}]   ;;  %s748_s5 = inlined_call_operand.vmem [shape: f32[1,128], index: 5, kind: input, shape index: {}]   ;;  %s749_s6 = inlined_call_operand.hbm [shape: f32[8,128], index: 6, kind: output, shape index: {}]  }
   0x1   :  { %12 = vsyncpa [#allocation7], 0 }
   0x2   :  { %13 = vsyncpa [#allocation5], 0  ;;  %s22_s23 = sshll.u32 %s745_s2, 4  ;;  %s624_s24 = smov [#allocation3]   ;;  %s23_s23 = int_to_ptr.hbm [resolvable:$true] %s22_s23 }
   0x3   :  { %s24_s25 = sshll.u32 %s624_s24, 4  ;;  %s37_s28 = sshll.u32 %s747_s4, 4  ;;  %s25_s25 = int_to_ptr.vmem [resolvable:$true] %s24_s25  ;;  %s38_s28 = int_to_ptr.hbm [resolvable:$true] %s37_s28 }
   0x4   :  { %s625_s29 = smov 128   ;;  %s626_s30 = smov 8  }
   0x5   :  { %30 = dma.hbm_to_vmem [thread:$0]  %s23_s23, 512, %s25_s25, [#allocation4], %s625_s29, %s625_s29, %s626_s30  }
   0x6   :  { %s627_s7 = smov [#allocation6]  }
   0x7   :  { %s39_s8 = sshll.u32 %s627_s7, 4  ;;  %s40_s8 = int_to_ptr.vmem [resolvable:$true] %s39_s8 }
   0x8   :  { %45 = dma.hbm_to_vmem [thread:$0]  %s38_s28, 2048, %s40_s8, [#allocation7], %s625_s29, %s625_s29, %s626_s30  }
   0x9   :  { %618 = dma.done.wait [#allocation4], 512  }
   0xa   :  { %619 = vsyncadd [#allocation4], 4294966784 }
   0xb   :  { %620 = dma.done.wait [#allocation7], 2048  }
   0xc   :  { %621 = vsyncadd [#allocation7], 4294965248  ;;  %v628_v0 = vmov 0   ;;  %v60_v1 = vld [vmem:[%s743_s0] sm:$0xff]  ;;  %v383_v2 = vld [vmem:[#allocation3 + $0x18] sm:$0xff]  ;;  %s635_s12 = smov [#allocation8]  }
   0xd   :  { %538 = vset.pattern.permute.xlu0 %v628_v0  ;;  %v381_v3 = vld [vmem:[#allocation3 + $0x8] sm:$0xff]  ;;  %v382_v4 = vld [vmem:[#allocation3 + $0x10] sm:$0xff]  ;;  %402 = vmatpush.msra.mxu0 %v383_v2  ;;  %v380_v5 = vld [vmem:[#allocation3] sm:$0xff]  ;;  %v629_v20 = vmov 683565275   ;;  %s504_s13 = sshll.u32 %s635_s12, 4  ;;  %s505_s13 = int_to_ptr.vmem [resolvable:$true] %s504_s13 }
   0xe   :  { %64 = vperm.xlu0 %538, %v60_v1   ;;  %425 = vmatpush.msra.mxu1 %v381_v3  ;;  %v539_v6 = vld [vmem:[%s744_s1] ss:$0 sm:$0xff]  ;;  %v630_v22 = vmov 2475754826   ;;  %v631_v24 = vmov 2131351028  }
   0xf   :  { %403 = vmatpush.msra.mxu0 %v382_v4  ;;  %v632_v26 = vmov 2102212464   ;;  %v633_v31 = vmov 920167782   ;;  %v634_v34 = vmov 1326507024  }
  0x10   :  { %426 = vmatpush.msra.mxu1 %v380_v5  ;;  %s506_s16 = sshll.u32 %s749_s6, 4  ;;  %s507_s16 = int_to_ptr.hbm [resolvable:$true] %s506_s16 }
  0x80   :  { %v65_v7 = vpop.permute.xlu0 %64 }
  0x81   :  { %v684_v8 = vmul.f32 %v539_v6, %v65_v7 }
  0x83   :  { %v74_v9 = vand.u32 2139095040, %v684_v8  ;;  %v71_v11 = vand.u32 2147483647, %v684_v8  ;;  %vm73_vm12 = vcmp.lt.s32.totalorder %v684_v8, 0 }
  0x85   :  { %v75_v10 = vshrl.u32 %v74_v9, 23  ;;  %v78_v14 = vand.u32 8388607, %v71_v11  ;;  %vm72_vm13 = vcmp.le.f32.partialorder %v71_v11, 0.7853982 }
  0x87   :  { %v517_v12 = vadd.s32 4294967169, %v75_v10  ;;  %v79_v17 = vor.u32 8388608, %v78_v14 }
  0x89   :  { %v81_v13 = vadd.s32 1, %v517_v12  ;;  %v692_v36 = vshll.u32 %v79_v17, 8 }
  0x8b   :  { %vm82_vm0 = vcmp.gt.s32.totalorder %v81_v13, 0  ;;  %v120_v48 = vand.u32 65535, %v692_v36  ;;  %v121_v50 = vshrl.u32 %v692_v36, 16 }
  0x8c   :  { %v83_v15 = vsel %vm82_vm0, %v81_v13, 0 }
  0x8d   :  { %v85_v16 = vand.u32 31, %v83_v15  ;;  %v690_v18 = vshrl.u32 %v83_v15, 5 }
  0x8f   :  { %v86_v19 = vsub.s32 32, %v85_v16  ;;  %v88_v21 = vshll.u32 %v629_v20, %v85_v16  ;;  %v91_v23 = vshll.u32 %v630_v22, %v85_v16  ;;  %v94_v25 = vshll.u32 %v631_v24, %v85_v16 }
  0x90   :  { %v97_v27 = vshll.u32 %v632_v26, %v85_v16  ;;  %v100_v33 = vshll.u32 %v633_v31, %v85_v16  ;;  %vm103_vm1 = vcmp.lt.s32.totalorder %v690_v18, 1  ;;  %vm106_vm2 = vcmp.lt.s32.totalorder %v690_v18, 4 }
  0x91   :  { %v89_v28 = vshrl.u32 %v630_v22, %v86_v19  ;;  %v92_v29 = vshrl.u32 %v631_v24, %v86_v19  ;;  %v95_v30 = vshrl.u32 %v632_v26, %v86_v19  ;;  %v98_v32 = vshrl.u32 %v633_v31, %v86_v19 }
  0x92   :  { %v101_v35 = vshrl.u32 %v634_v34, %v86_v19  ;;  %vm105_vm3 = vcmp.lt.s32.totalorder %v690_v18, 3  ;;  %vm104_vm4 = vcmp.lt.s32.totalorder %v690_v18, 2  ;;  %v87_v13 = vshrl.u32 %v629_v20, %v86_v19 }
  0x93   :  { %v90_v37 = vor.u32 %v89_v28, %v88_v21  ;;  %v93_v38 = vor.u32 %v92_v29, %v91_v23  ;;  %v96_v39 = vor.u32 %v95_v30, %v94_v25  ;;  %v99_v40 = vor.u32 %v98_v32, %v97_v27 }
  0x94   :  { %v102_v41 = vor.u32 %v101_v35, %v100_v33 }
  0x95   :  { %v111_v42 = vsel %vm103_vm1, %v90_v37, %v93_v38  ;;  %v112_v43 = vsel %vm106_vm2, %v99_v40, 920167782  ;;  %v115_v44 = vsel %vm103_vm1, %v93_v38, %v96_v39  ;;  %v108_v9 = vsel %vm106_vm2, %v96_v39, 2102212464 }
  0x96   :  { %v113_v45 = vsel %vm105_vm3, %v96_v39, %v112_v43  ;;  %v116_v46 = vsel %vm106_vm2, %v102_v41, 1326507024  ;;  %v107_v22 = vsel %vm103_vm1, %v87_v13, %v90_v37  ;;  %v109_v23 = vsel %vm105_vm3, %v93_v38, %v108_v9 }
  0x97   :  { %v117_v47 = vsel %vm105_vm3, %v99_v40, %v116_v46  ;;  %v114_v49 = vsel %vm104_vm4, %v111_v42, %v113_v45  ;;  %v110_v20 = vsel %vm104_vm4, %v107_v22, %v109_v23  ;;  %vm384_vm1 = vcmask 130048  }
  0x98   :  { %v118_v51 = vsel %vm104_vm4, %v115_v44, %v117_v47  ;;  %v144_v52 = vand.u32 65535, %v114_v49  ;;  %v145_v53 = vshrl.u32 %v114_v49, 16  ;;  %v164_v32 = vmul.u32 %v692_v36, %v110_v20  ;;  %v472_v20 = vld [vmem:[#allocation6 + $0x70] sm:$0xff] }
  0x99   :  { %v122_v54 = vand.u32 65535, %v118_v51  ;;  %v123_v55 = vshrl.u32 %v118_v51, 16 }
  0x9a   :  { %v147_v56 = vmul.u32 %v145_v53, %v120_v48  ;;  %v148_v57 = vmul.u32 %v144_v52, %v121_v50  ;;  %v146_v60 = vmul.u32 %v144_v52, %v120_v48  ;;  %v149_v1 = vmul.u32 %v145_v53, %v121_v50 }
  0x9b   :  { %v125_v58 = vmul.u32 %v123_v55, %v120_v48  ;;  %v126_v59 = vmul.u32 %v122_v54, %v121_v50  ;;  %v124_v62 = vmul.u32 %v122_v54, %v120_v48  ;;  %v127_v2 = vmul.u32 %v123_v55, %v121_v50 }
  0x9c   :  { %v150_v61 = vshll.u32 %v147_v56, 16  ;;  %v152_v3 = vshll.u32 %v148_v57, 16  ;;  %v151_v17 = vshrl.u32 %v147_v56, 16  ;;  %v153_v26 = vshrl.u32 %v148_v57, 16 }
  0x9d   :  { %v128_v63 = vshll.u32 %v125_v58, 16  ;;  %v130_v5 = vshll.u32 %v126_v59, 16  ;;  %v129_v24 = vshrl.u32 %v125_v58, 16  ;;  %v131_v28 = vshrl.u32 %v126_v59, 16 }
  0x9e   :  { %vm154_vm5 = vc.u32 %v146_v60, %v150_v61  ;;  %v156_v4 = vadd.s32 %v150_v61, %v146_v60 }
  0x9f   :  { %vm132_vm6 = vc.u32 %v124_v62, %v128_v63  ;;  %v134_v6 = vadd.s32 %v128_v63, %v124_v62  ;;  %v155_v7 = vsel %vm154_vm5, 1, %v628_v0  ;;  %vm214_vm5 = vweird.f32 %v684_v8 }
  0xa0   :  { %v133_v10 = vsel %vm132_vm6, 1, %v628_v0  ;;  %v157_v12 = vadd.s32 %v155_v7, %v149_v1  ;;  %vm158_vm7 = vc.u32 %v156_v4, %v152_v3 }
  0xa1   :  { %v135_v14 = vadd.s32 %v133_v10, %v127_v2  ;;  %vm136_vm8 = vc.u32 %v134_v6, %v130_v5  ;;  %v159_v15 = vsel %vm158_vm7, 1, %v628_v0 }
  0xa2   :  { %v137_v16 = vsel %vm136_vm8, 1, %v628_v0  ;;  %v161_v21 = vadd.s32 %v159_v15, %v157_v12  ;;  %v160_v0 = vadd.s32 %v156_v4, %v152_v3 }
  0xa3   :  { %v139_v25 = vadd.s32 %v137_v16, %v135_v14 }
  0xa4   :  { %v162_v27 = vadd.s32 %v161_v21, %v151_v17 }
  0xa5   :  { %v140_v19 = vadd.s32 %v139_v25, %v129_v24 }
  0xa6   :  { %v163_v29 = vadd.s32 %v162_v27, %v153_v26 }
  0xa7   :  { %v141_v30 = vadd.s32 %v140_v19, %v131_v28  ;;  %v473_v19 = vld [vmem:[#allocation6 + $0x78] sm:$0xff] }
  0xa8   :  { %v167_v31 = vadd.s32 1, %v163_v29  ;;  %478 = vmatpush.msra.mxu2 %v473_v19 }
  0xa9   :  { %vm166_vm9 = vc.u32 %v141_v30, %v160_v0  ;;  %v165_v44 = vadd.s32 %v160_v0, %v141_v30  ;;  %v470_v30 = vld [vmem:[#allocation6 + $0x60] sm:$0xff]  ;;  %v469_v0 = vld [vmem:[#allocation6 + $0x58] sm:$0xff] }
  0xaa   :  { %v168_v33 = vsel %vm166_vm9, %v167_v31, %v163_v29  ;;  %479 = vmatpush.msra.mxu2 %v472_v20  ;;  %v471_v29 = vld [vmem:[#allocation6 + $0x68] sm:$0xff]  ;;  %v468_v31 = vld [vmem:[#allocation6 + $0x50] sm:$0xff] }
  0xab   :  { %v169_v34 = vadd.s32 %v168_v33, %v164_v32  ;;  %v467_v32 = vld [vmem:[#allocation6 + $0x48] sm:$0xff]  ;;  %v465_v33 = vld [vmem:[#allocation6 + $0x38] sm:$0xff] }
  0xac   :  { %480 = vmatpush.msra.mxu2 %v471_v29 }
  0xad   :  { %v170_v35 = vadd.s32 536870912, %v169_v34 }
  0xae   :  { %481 = vmatpush.msra.mxu2 %v470_v30 }
  0xaf   :  { %v171_v37 = vshrl.u32 %v170_v35, 30  ;;  %v463_v35 = vld [vmem:[#allocation6 + $0x28] sm:$0xff] }
  0xb0   :  { %482 = vmatpush.msra.mxu2 %v469_v0 }
  0xb1   :  { %v172_v38 = vshll.u32 %v171_v37, 30  ;;  %v195_v57 = vsub.s32 4, %v171_v37 }
  0xb2   :  { %483 = vmatpush.msra.mxu2 %v468_v31 }
  0xb3   :  { %v173_v39 = vsub.s32 %v169_v34, %v172_v38  ;;  %v196_v62 = vsel %vm73_vm12, %v195_v57, %v171_v37  ;;  %v464_v34 = vld [vmem:[#allocation6 + $0x30] sm:$0xff]  ;;  %v462_v37 = vld [vmem:[#allocation6 + $0x20] sm:$0xff]  ;;  %v461_v38 = vld [vmem:[#allocation6 + $0x18] sm:$0xff] }
  0xb4   :  { %v198_v2 = vsel %vm72_vm13, 0, %v196_v62  ;;  %484 = vmatpush.msra.mxu2 %v467_v32 }
  0xb5   :  { %vm174_vm10 = vcmp.lt.s32.totalorder %v173_v39, 0  ;;  %v175_v40 = vsub.s32 0, %v173_v39  ;;  %v215_v7 = vadd.s32 3, %v198_v2  ;;  %v370_v13 = vand.u32 3, %v198_v2 }
  0xb7   :  { %v176_v41 = vsel %vm174_vm10, %v175_v40, %v173_v39  ;;  %v216_v14 = vand.u32 3, %v215_v7  ;;  %vm371_vm14 = vcmp.lt.s32.totalorder %v370_v13, 2  ;;  %vm372_vm15 = vcmp.eq.s32.totalorder %v370_v13, 0  ;;  %v540_v40 = vld [vmem:[%s746_s3] ss:$0 sm:$0xff] }
  0xb8   :  { %v177_v42 = vclz %v176_v41  ;;  %vm375_vm0 = vcmp.eq.s32.totalorder %v370_v13, 2 }
  0xb9   :  { %vm217_vm2 = vcmp.lt.s32.totalorder %v216_v14, 2  ;;  %vm218_vm3 = vcmp.eq.s32.totalorder %v216_v14, 0  ;;  %vm221_vm4 = vcmp.eq.s32.totalorder %v216_v14, 2 }
  0xba   :  { %v518_v43 = vadd.s32 4294967294, %v177_v42 }
  0xbc   :  { %vm519_vm11 = vcmp.lt.s32.totalorder %v518_v43, 0 }
  0xbd   :  { %v180_v18 = vsel %vm519_vm11, 0, %v518_v43  ;;  %v459_v43 = vld [vmem:[#allocation6 + $0x8] sm:$0xff] }
  0xbe   :  { %v181_v45 = vsub.s32 32, %v180_v18  ;;  %v185_v46 = vsub.s32 4294967266, %v180_v18  ;;  %v182_v47 = vshll.u32 %v173_v39, %v180_v18  ;;  %v460_v39 = vld [vmem:[#allocation6 + $0x10] sm:$0xff] }
  0xc0   :  { %v183_v48 = vshrl.u32 %v165_v44, %v181_v45  ;;  %v186_v36 = vadd.s32 127, %v185_v46  ;;  %v458_v44 = vld [vmem:[#allocation6] sm:$0xff] }
  0xc2   :  { %v184_v49 = vor.u32 %v183_v48, %v182_v47  ;;  %v187_v50 = vshll.u32 %v186_v36, 23 }
  0xc4   :  { %v188_v51 = vor.u32 4788187, %v187_v50  ;;  %v191_v53 = vcvt.s32.f32 %v184_v49 }
  0xc6   :  { %v189_v52 = vand.u32 2147483647, %v188_v51 }
  0xc8   :  { %v192_v54 = vmul.f32 %v191_v53, %v189_v52 }
  0xca   :  { %v193_v55 = vxor.u32 2147483648, %v192_v54 }
  0xcc   :  { %v194_v56 = vsel %vm73_vm12, %v193_v55, %v192_v54 }
  0xcd   :  { %v197_v58 = vsel %vm72_vm13, %v684_v8, %v194_v56  ;;  %v466_v8 = vld [vmem:[#allocation6 + $0x40] sm:$0xff] }
  0xce   :  { %v199_v59 = vmul.f32 %v197_v58, %v197_v58  ;;  %485 = vmatpush.msra.mxu2 %v466_v8 }
  0xd0   :  { %v200_v60 = vmul.f32 -0.001358992, %v199_v59  ;;  %v207_v61 = vmul.f32 -0.00019511016, %v199_v59  ;;  %486 = vmatpush.msra.mxu2 %v465_v33 }
  0xd2   :  { %v201_v63 = vadd.f32 0.041655596, %v200_v60  ;;  %v208_v1 = vadd.f32 0.008332121, %v207_v61  ;;  %487 = vmatpush.msra.mxu2 %v464_v34 }
  0xd4   :  { %v202_v3 = vmul.f32 %v201_v63, %v199_v59  ;;  %v209_v4 = vmul.f32 %v208_v1, %v199_v59  ;;  %488 = vmatpush.msra.mxu2 %v463_v35 }
  0xd6   :  { %v203_v5 = vadd.f32 -0.4999988, %v202_v3  ;;  %v210_v6 = vadd.f32 -0.16666654, %v209_v4  ;;  %489 = vmatpush.msra.mxu2 %v462_v37 }
  0xd8   :  { %v204_v9 = vmul.f32 %v203_v5, %v199_v59  ;;  %v211_v10 = vmul.f32 %v210_v6, %v199_v59  ;;  %490 = vmatpush.msra.mxu2 %v461_v38  ;;  %v541_v59 = vld [vmem:[%s748_s5] ss:$0 sm:$0xff] }
  0xda   :  { %v205_v12 = vadd.f32 1.0, %v204_v9  ;;  %v212_v11 = vadd.f32 1.0, %v211_v10  ;;  %491 = vmatpush.msra.mxu2 %v460_v39 }
  0xdc   :  { %v213_v15 = vmul.f32 %v212_v11, %v197_v58  ;;  %v222_v16 = vxor.u32 2147483648, %v205_v12  ;;  %492 = vmatpush.msra.mxu2 %v459_v43 }
  0xde   :  { %v219_v17 = vxor.u32 2147483648, %v213_v15  ;;  %v377_v22 = vsel %vm375_vm0, %v222_v16, %v213_v15  ;;  %v223_v24 = vsel %vm221_vm4, %v222_v16, %v213_v15  ;;  %493 = vmatpush.msra.mxu2 %v458_v44 }
  0xe0   :  { %v374_v21 = vsel %vm372_vm15, %v205_v12, %v219_v17  ;;  %v220_v23 = vsel %vm218_vm3, %v205_v12, %v219_v17 }
  0xe1   :  { %v378_v25 = vsel %vm371_vm14, %v374_v21, %v377_v22  ;;  %v224_v26 = vsel %vm217_vm2, %v220_v23, %v223_v24 }
  0xe2   :  { %v379_v27 = vsel %vm214_vm5, nan, %v378_v25  ;;  %v225_v28 = vsel %vm214_vm5, nan, %v224_v26 }
  0xe3   :  { %523 = vmatmul.msk.f32.vlgmr.msra.gmra.mxu0 %vm384_vm1, %v379_v27  ;;  %524 = vmatmul.msk.f32.vlgmr.msra.gmra.mxu1 %vm384_vm1, %v225_v28 }
 0x160   :  { %v405_v41 = vpop.f32.mrf.mxu0  ;;  %v428_v42 = vpop.f32.mrf.mxu1 }
 0x161   :  { %v429_v18 = vadd.f32 %v428_v42, %v405_v41 }
 0x163   :  { %v435_v45 = vadd.f32 %v540_v40, %v429_v18 }
 0x165   :  { %v525_v46 = vmul.f32 -1.442695, %v435_v45 }
 0x167   :  { %542 = vpow2.f32 %v525_v46 }
 0x16d   :  { %v543_v47 = vpop.eup %542 }
 0x16e   :  { %v439_v48 = vadd.f32 1.0, %v543_v47 }
 0x170   :  { %544 = vrcp.f32 %v439_v48  ;;  %v451_v51 = vand.u32 2147483648, %v439_v48  ;;  %v449_v53 = vand.u32 2147483647, %v439_v48  ;;  %vm445_vm7 = vweird.f32 %v439_v48 }
 0x172   :  { %v452_v55 = vor.u32 1.1754944e-38, %v451_v51  ;;  %vm450_vm9 = vcmp.eq.f32.partialorder %v449_v53, 8.507059e+37 }
 0x176   :  { %v545_v36 = vpop.eup %544 }
 0x177   :  { %v441_v49 = vmul.f32 %v545_v36, %v439_v48  ;;  %vm446_vm6 = vweird.f32 %v545_v36 }
 0x178   :  { %vm447_vm8 = vmor %vm445_vm7, %vm446_vm6 }
 0x179   :  { %v442_v50 = vsub.f32 1.0, %v441_v49 }
 0x17b   :  { %v443_v52 = vmul.f32 %v545_v36, %v442_v50 }
 0x17d   :  { %v444_v54 = vadd.f32 %v545_v36, %v443_v52 }
 0x17f   :  { %v448_v56 = vsel %vm447_vm8, %v545_v36, %v444_v54 }
 0x180   :  { %v453_v57 = vsel %vm450_vm9, %v452_v55, %v448_v56 }
 0x181   :  { %v455_v58 = vmul.f32 %v453_v57, %v435_v45 }
 0x183   :  { %494 = vmatmul.f32.vlgmr.msra.gmra.mxu2 %v455_v58 }
 0x206   :  { %v495_v60 = vpop.f32.mrf.mxu2 }
 0x207   :  { %v496_v61 = vadd.f32 %v541_v59, %v495_v60 }
 0x209   :  { %498 = vst [vmem:[#allocation8] sm:$0xff] %v496_v61 }
 0x20a   :  { %509 = dma.vmem_to_hbm [thread:$0]  %s505_s13, 128, %s507_s16, [#allocation5]  }
 0x20b   :  { %622 = dma.done.wait [#allocation5], 128  }
 0x20c   :  { %623 = vsyncadd [#allocation5], 4294967168 }
 0x20d   :  { %514 = vsyncpa [#allocation4], 1 }
 0x20e   :  { %515 = vsyncpa [#allocation7], 1 }
 0x20f   :  { %516 = vsyncpa [#allocation5], 1 }

// kernel: tpu_custom_call.1
= control target key start
LH: loop header
LB: loop body
LE: loop exit
PB: predicated region body
PF: predicated region fallthrough
CT: control target
= control target key end

     0   :  { %11 = vsyncpa [#allocation4], 0  ;;  %s743_s0 = inlined_call_operand.vmem [shape: f32[8,1], index: 0, kind: input, shape index: {}]   ;;  %s744_s1 = inlined_call_operand.vmem [shape: f32[1,16], index: 1, kind: input, shape index: {}]   ;;  %s745_s2 = inlined_call_operand.hbm [shape: f32[32,128], index: 2, kind: input, shape index: {}]   ;;  %s746_s3 = inlined_call_operand.vmem [shape: f32[1,128], index: 3, kind: input, shape index: {}]   ;;  %s747_s4 = inlined_call_operand.hbm [shape: f32[128,128], index: 4, kind: input, shape index: {}]   ;;  %s748_s5 = inlined_call_operand.vmem [shape: f32[1,128], index: 5, kind: input, shape index: {}]   ;;  %s749_s6 = inlined_call_operand.hbm [shape: f32[8,128], index: 6, kind: output, shape index: {}]  }
   0x1   :  { %12 = vsyncpa [#allocation7], 0 }
   0x2   :  { %13 = vsyncpa [#allocation5], 0  ;;  %s22_s23 = sshll.u32 %s745_s2, 4  ;;  %s624_s24 = smov [#allocation3]   ;;  %s23_s23 = int_to_ptr.hbm [resolvable:$true] %s22_s23 }
   0x3   :  { %s24_s25 = sshll.u32 %s624_s24, 4  ;;  %s37_s28 = sshll.u32 %s747_s4, 4  ;;  %s25_s25 = int_to_ptr.vmem [resolvable:$true] %s24_s25  ;;  %s38_s28 = int_to_ptr.hbm [resolvable:$true] %s37_s28 }
   0x4   :  { %s625_s29 = smov 128   ;;  %s626_s30 = smov 8  }
   0x5   :  { %30 = dma.hbm_to_vmem [thread:$0]  %s23_s23, 512, %s25_s25, [#allocation4], %s625_s29, %s625_s29, %s626_s30  }
   0x6   :  { %s627_s7 = smov [#allocation6]  }
   0x7   :  { %s39_s8 = sshll.u32 %s627_s7, 4  ;;  %s40_s8 = int_to_ptr.vmem [resolvable:$true] %s39_s8 }
   0x8   :  { %45 = dma.hbm_to_vmem [thread:$0]  %s38_s28, 2048, %s40_s8, [#allocation7], %s625_s29, %s625_s29, %s626_s30  }
   0x9   :  { %618 = dma.done.wait [#allocation4], 512  }
   0xa   :  { %619 = vsyncadd [#allocation4], 4294966784 }
   0xb   :  { %620 = dma.done.wait [#allocation7], 2048  }
   0xc   :  { %621 = vsyncadd [#allocation7], 4294965248  ;;  %v628_v0 = vmov 0   ;;  %v60_v1 = vld [vmem:[%s743_s0] sm:$0xff]  ;;  %v383_v2 = vld [vmem:[#allocation3 + $0x18] sm:$0xff]  ;;  %s635_s12 = smov [#allocation8]  }
   0xd   :  { %538 = vset.pattern.permute.xlu0 %v628_v0  ;;  %v381_v3 = vld [vmem:[#allocation3 + $0x8] sm:$0xff]  ;;  %v382_v4 = vld [vmem:[#allocation3 + $0x10] sm:$0xff]  ;;  %402 = vmatpush.msra.mxu0 %v383_v2  ;;  %v380_v5 = vld [vmem:[#allocation3] sm:$0xff]  ;;  %v629_v20 = vmov 683565275   ;;  %s504_s13 = sshll.u32 %s635_s12, 4  ;;  %s505_s13 = int_to_ptr.vmem [resolvable:$true] %s504_s13 }
   0xe   :  { %64 = vperm.xlu0 %538, %v60_v1   ;;  %425 = vmatpush.msra.mxu1 %v381_v3  ;;  %v539_v6 = vld [vmem:[%s744_s1] ss:$0 sm:$0xff]  ;;  %v630_v22 = vmov 2475754826   ;;  %v631_v24 = vmov 2131351028  }
   0xf   :  { %403 = vmatpush.msra.mxu0 %v382_v4  ;;  %v632_v26 = vmov 2102212464   ;;  %v633_v31 = vmov 920167782   ;;  %v634_v34 = vmov 1326507024  }
  0x10   :  { %426 = vmatpush.msra.mxu1 %v380_v5  ;;  %s506_s16 = sshll.u32 %s749_s6, 4  ;;  %s507_s16 = int_to_ptr.hbm [resolvable:$true] %s506_s16 }
  0x80   :  { %v65_v7 = vpop.permute.xlu0 %64 }
  0x81   :  { %v684_v8 = vmul.f32 %v539_v6, %v65_v7 }
  0x83   :  { %v74_v9 = vand.u32 2139095040, %v684_v8  ;;  %v71_v11 = vand.u32 2147483647, %v684_v8  ;;  %vm73_vm12 = vcmp.lt.s32.totalorder %v684_v8, 0 }
  0x85   :  { %v75_v10 = vshrl.u32 %v74_v9, 23  ;;  %v78_v14 = vand.u32 8388607, %v71_v11  ;;  %vm72_vm13 = vcmp.le.f32.partialorder %v71_v11, 0.7853982 }
  0x87   :  { %v517_v12 = vadd.s32 4294967169, %v75_v10  ;;  %v79_v17 = vor.u32 8388608, %v78_v14 }
  0x89   :  { %v81_v13 = vadd.s32 1, %v517_v12  ;;  %v692_v36 = vshll.u32 %v79_v17, 8 }
  0x8b   :  { %vm82_vm0 = vcmp.gt.s32.totalorder %v81_v13, 0  ;;  %v120_v48 = vand.u32 65535, %v692_v36  ;;  %v121_v50 = vshrl.u32 %v692_v36, 16 }
  0x8c   :  { %v83_v15 = vsel %vm82_vm0, %v81_v13, 0 }
  0x8d   :  { %v85_v16 = vand.u32 31, %v83_v15  ;;  %v690_v18 = vshrl.u32 %v83_v15, 5 }
  0x8f   :  { %v86_v19 = vsub.s32 32, %v85_v16  ;;  %v88_v21 = vshll.u32 %v629_v20, %v85_v16  ;;  %v91_v23 = vshll.u32 %v630_v22, %v85_v16  ;;  %v94_v25 = vshll.u32 %v631_v24, %v85_v16 }
  0x90   :  { %v97_v27 = vshll.u32 %v632_v26, %v85_v16  ;;  %v100_v33 = vshll.u32 %v633_v31, %v85_v16  ;;  %vm103_vm1 = vcmp.lt.s32.totalorder %v690_v18, 1  ;;  %vm106_vm2 = vcmp.lt.s32.totalorder %v690_v18, 4 }
  0x91   :  { %v89_v28 = vshrl.u32 %v630_v22, %v86_v19  ;;  %v92_v29 = vshrl.u32 %v631_v24, %v86_v19  ;;  %v95_v30 = vshrl.u32 %v632_v26, %v86_v19  ;;  %v98_v32 = vshrl.u32 %v633_v31, %v86_v19 }
  0x92   :  { %v101_v35 = vshrl.u32 %v634_v34, %v86_v19  ;;  %vm105_vm3 = vcmp.lt.s32.totalorder %v690_v18, 3  ;;  %vm104_vm4 = vcmp.lt.s32.totalorder %v690_v18, 2  ;;  %v87_v13 = vshrl.u32 %v629_v20, %v86_v19 }
  0x93   :  { %v90_v37 = vor.u32 %v89_v28, %v88_v21  ;;  %v93_v38 = vor.u32 %v92_v29, %v91_v23  ;;  %v96_v39 = vor.u32 %v95_v30, %v94_v25  ;;  %v99_v40 = vor.u32 %v98_v32, %v97_v27 }
  0x94   :  { %v102_v41 = vor.u32 %v101_v35, %v100_v33 }
  0x95   :  { %v111_v42 = vsel %vm103_vm1, %v90_v37, %v93_v38  ;;  %v112_v43 = vsel %vm106_vm2, %v99_v40, 920167782  ;;  %v115_v44 = vsel %vm103_vm1, %v93_v38, %v96_v39  ;;  %v108_v9 = vsel %vm106_vm2, %v96_v39, 2102212464 }
  0x96   :  { %v113_v45 = vsel %vm105_vm3, %v96_v39, %v112_v43  ;;  %v116_v46 = vsel %vm106_vm2, %v102_v41, 1326507024  ;;  %v107_v22 = vsel %vm103_vm1, %v87_v13, %v90_v37  ;;  %v109_v23 = vsel %vm105_vm3, %v93_v38, %v108_v9 }
  0x97   :  { %v117_v47 = vsel %vm105_vm3, %v99_v40, %v116_v46  ;;  %v114_v49 = vsel %vm104_vm4, %v111_v42, %v113_v45  ;;  %v110_v20 = vsel %vm104_vm4, %v107_v22, %v109_v23  ;;  %vm384_vm1 = vcmask 130048  }
  0x98   :  { %v118_v51 = vsel %vm104_vm4, %v115_v44, %v117_v47  ;;  %v144_v52 = vand.u32 65535, %v114_v49  ;;  %v145_v53 = vshrl.u32 %v114_v49, 16  ;;  %v164_v32 = vmul.u32 %v692_v36, %v110_v20  ;;  %v472_v20 = vld [vmem:[#allocation6 + $0x70] sm:$0xff] }
  0x99   :  { %v122_v54 = vand.u32 65535, %v118_v51  ;;  %v123_v55 = vshrl.u32 %v118_v51, 16 }
  0x9a   :  { %v147_v56 = vmul.u32 %v145_v53, %v120_v48  ;;  %v148_v57 = vmul.u32 %v144_v52, %v121_v50  ;;  %v146_v60 = vmul.u32 %v144_v52, %v120_v48  ;;  %v149_v1 = vmul.u32 %v145_v53, %v121_v50 }
  0x9b   :  { %v125_v58 = vmul.u32 %v123_v55, %v120_v48  ;;  %v126_v59 = vmul.u32 %v122_v54, %v121_v50  ;;  %v124_v62 = vmul.u32 %v122_v54, %v120_v48  ;;  %v127_v2 = vmul.u32 %v123_v55, %v121_v50 }
  0x9c   :  { %v150_v61 = vshll.u32 %v147_v56, 16  ;;  %v152_v3 = vshll.u32 %v148_v57, 16  ;;  %v151_v17 = vshrl.u32 %v147_v56, 16  ;;  %v153_v26 = vshrl.u32 %v148_v57, 16 }
  0x9d   :  { %v128_v63 = vshll.u32 %v125_v58, 16  ;;  %v130_v5 = vshll.u32 %v126_v59, 16  ;;  %v129_v24 = vshrl.u32 %v125_v58, 16  ;;  %v131_v28 = vshrl.u32 %v126_v59, 16 }
  0x9e   :  { %vm154_vm5 = vc.u32 %v146_v60, %v150_v61  ;;  %v156_v4 = vadd.s32 %v150_v61, %v146_v60 }
  0x9f   :  { %vm132_vm6 = vc.u32 %v124_v62, %v128_v63  ;;  %v134_v6 = vadd.s32 %v128_v63, %v124_v62  ;;  %v155_v7 = vsel %vm154_vm5, 1, %v628_v0  ;;  %vm214_vm5 = vweird.f32 %v684_v8 }
  0xa0   :  { %v133_v10 = vsel %vm132_vm6, 1, %v628_v0  ;;  %v157_v12 = vadd.s32 %v155_v7, %v149_v1  ;;  %vm158_vm7 = vc.u32 %v156_v4, %v152_v3 }
  0xa1   :  { %v135_v14 = vadd.s32 %v133_v10, %v127_v2  ;;  %vm136_vm8 = vc.u32 %v134_v6, %v130_v5  ;;  %v159_v15 = vsel %vm158_vm7, 1, %v628_v0 }
  0xa2   :  { %v137_v16 = vsel %vm136_vm8, 1, %v628_v0  ;;  %v161_v21 = vadd.s32 %v159_v15, %v157_v12  ;;  %v160_v0 = vadd.s32 %v156_v4, %v152_v3 }
  0xa3   :  { %v139_v25 = vadd.s32 %v137_v16, %v135_v14 }
  0xa4   :  { %v162_v27 = vadd.s32 %v161_v21, %v151_v17 }
  0xa5   :  { %v140_v19 = vadd.s32 %v139_v25, %v129_v24 }
  0xa6   :  { %v163_v29 = vadd.s32 %v162_v27, %v153_v26 }
  0xa7   :  { %v141_v30 = vadd.s32 %v140_v19, %v131_v28  ;;  %v473_v19 = vld [vmem:[#allocation6 + $0x78] sm:$0xff] }
  0xa8   :  { %v167_v31 = vadd.s32 1, %v163_v29  ;;  %478 = vmatpush.msra.mxu2 %v473_v19 }
  0xa9   :  { %vm166_vm9 = vc.u32 %v141_v30, %v160_v0  ;;  %v165_v44 = vadd.s32 %v160_v0, %v141_v30  ;;  %v470_v30 = vld [vmem:[#allocation6 + $0x60] sm:$0xff]  ;;  %v469_v0 = vld [vmem:[#allocation6 + $0x58] sm:$0xff] }
  0xaa   :  { %v168_v33 = vsel %vm166_vm9, %v167_v31, %v163_v29  ;;  %479 = vmatpush.msra.mxu2 %v472_v20  ;;  %v471_v29 = vld [vmem:[#allocation6 + $0x68] sm:$0xff]  ;;  %v468_v31 = vld [vmem:[#allocation6 + $0x50] sm:$0xff] }
  0xab   :  { %v169_v34 = vadd.s32 %v168_v33, %v164_v32  ;;  %v467_v32 = vld [vmem:[#allocation6 + $0x48] sm:$0xff]  ;;  %v465_v33 = vld [vmem:[#allocation6 + $0x38] sm:$0xff] }
  0xac   :  { %480 = vmatpush.msra.mxu2 %v471_v29 }
  0xad   :  { %v170_v35 = vadd.s32 536870912, %v169_v34 }
  0xae   :  { %481 = vmatpush.msra.mxu2 %v470_v30 }
  0xaf   :  { %v171_v37 = vshrl.u32 %v170_v35, 30  ;;  %v463_v35 = vld [vmem:[#allocation6 + $0x28] sm:$0xff] }
  0xb0   :  { %482 = vmatpush.msra.mxu2 %v469_v0 }
  0xb1   :  { %v172_v38 = vshll.u32 %v171_v37, 30  ;;  %v195_v57 = vsub.s32 4, %v171_v37 }
  0xb2   :  { %483 = vmatpush.msra.mxu2 %v468_v31 }
  0xb3   :  { %v173_v39 = vsub.s32 %v169_v34, %v172_v38  ;;  %v196_v62 = vsel %vm73_vm12, %v195_v57, %v171_v37  ;;  %v464_v34 = vld [vmem:[#allocation6 + $0x30] sm:$0xff]  ;;  %v462_v37 = vld [vmem:[#allocation6 + $0x20] sm:$0xff]  ;;  %v461_v38 = vld [vmem:[#allocation6 + $0x18] sm:$0xff] }
  0xb4   :  { %v198_v2 = vsel %vm72_vm13, 0, %v196_v62  ;;  %484 = vmatpush.msra.mxu2 %v467_v32 }
  0xb5   :  { %vm174_vm10 = vcmp.lt.s32.totalorder %v173_v39, 0  ;;  %v175_v40 = vsub.s32 0, %v173_v39  ;;  %v215_v7 = vadd.s32 3, %v198_v2  ;;  %v370_v13 = vand.u32 3, %v198_v2 }
  0xb7   :  { %v176_v41 = vsel %vm174_vm10, %v175_v40, %v173_v39  ;;  %v216_v14 = vand.u32 3, %v215_v7  ;;  %vm371_vm14 = vcmp.lt.s32.totalorder %v370_v13, 2  ;;  %vm372_vm15 = vcmp.eq.s32.totalorder %v370_v13, 0  ;;  %v540_v40 = vld [vmem:[%s746_s3] ss:$0 sm:$0xff] }
  0xb8   :  { %v177_v42 = vclz %v176_v41  ;;  %vm375_vm0 = vcmp.eq.s32.totalorder %v370_v13, 2 }
  0xb9   :  { %vm217_vm2 = vcmp.lt.s32.totalorder %v216_v14, 2  ;;  %vm218_vm3 = vcmp.eq.s32.totalorder %v216_v14, 0  ;;  %vm221_vm4 = vcmp.eq.s32.totalorder %v216_v14, 2 }
  0xba   :  { %v518_v43 = vadd.s32 4294967294, %v177_v42 }
  0xbc   :  { %vm519_vm11 = vcmp.lt.s32.totalorder %v518_v43, 0 }
  0xbd   :  { %v180_v18 = vsel %vm519_vm11, 0, %v518_v43  ;;  %v459_v43 = vld [vmem:[#allocation6 + $0x8] sm:$0xff] }
  0xbe   :  { %v181_v45 = vsub.s32 32, %v180_v18  ;;  %v185_v46 = vsub.s32 4294967266, %v180_v18  ;;  %v182_v47 = vshll.u32 %v173_v39, %v180_v18  ;;  %v460_v39 = vld [vmem:[#allocation6 + $0x10] sm:$0xff] }
  0xc0   :  { %v183_v48 = vshrl.u32 %v165_v44, %v181_v45  ;;  %v186_v36 = vadd.s32 127, %v185_v46  ;;  %v458_v44 = vld [vmem:[#allocation6] sm:$0xff] }
  0xc2   :  { %v184_v49 = vor.u32 %v183_v48, %v182_v47  ;;  %v187_v50 = vshll.u32 %v186_v36, 23 }
  0xc4   :  { %v188_v51 = vor.u32 4788187, %v187_v50  ;;  %v191_v53 = vcvt.s32.f32 %v184_v49 }
  0xc6   :  { %v189_v52 = vand.u32 2147483647, %v188_v51 }
  0xc8   :  { %v192_v54 = vmul.f32 %v191_v53, %v189_v52 }
  0xca   :  { %v193_v55 = vxor.u32 2147483648, %v192_v54 }
  0xcc   :  { %v194_v56 = vsel %vm73_vm12, %v193_v55, %v192_v54 }
  0xcd   :  { %v197_v58 = vsel %vm72_vm13, %v684_v8, %v194_v56  ;;  %v466_v8 = vld [vmem:[#allocation6 + $0x40] sm:$0xff] }
  0xce   :  { %v199_v59 = vmul.f32 %v197_v58, %v197_v58  ;;  %485 = vmatpush.msra.mxu2 %v466_v8 }
  0xd0   :  { %v200_v60 = vmul.f32 -0.001358992, %v199_v59  ;;  %v207_v61 = vmul.f32 -0.00019511016, %v199_v59  ;;  %486 = vmatpush.msra.mxu2 %v465_v33 }
  0xd2   :  { %v201_v63 = vadd.f32 0.041655596, %v200_v60  ;;  %v208_v1 = vadd.f32 0.008332121, %v207_v61  ;;  %487 = vmatpush.msra.mxu2 %v464_v34 }
  0xd4   :  { %v202_v3 = vmul.f32 %v201_v63, %v199_v59  ;;  %v209_v4 = vmul.f32 %v208_v1, %v199_v59  ;;  %488 = vmatpush.msra.mxu2 %v463_v35 }
  0xd6   :  { %v203_v5 = vadd.f32 -0.4999988, %v202_v3  ;;  %v210_v6 = vadd.f32 -0.16666654, %v209_v4  ;;  %489 = vmatpush.msra.mxu2 %v462_v37 }
  0xd8   :  { %v204_v9 = vmul.f32 %v203_v5, %v199_v59  ;;  %v211_v10 = vmul.f32 %v210_v6, %v199_v59  ;;  %490 = vmatpush.msra.mxu2 %v461_v38  ;;  %v541_v59 = vld [vmem:[%s748_s5] ss:$0 sm:$0xff] }
  0xda   :  { %v205_v12 = vadd.f32 1.0, %v204_v9  ;;  %v212_v11 = vadd.f32 1.0, %v211_v10  ;;  %491 = vmatpush.msra.mxu2 %v460_v39 }
  0xdc   :  { %v213_v15 = vmul.f32 %v212_v11, %v197_v58  ;;  %v222_v16 = vxor.u32 2147483648, %v205_v12  ;;  %492 = vmatpush.msra.mxu2 %v459_v43 }
  0xde   :  { %v219_v17 = vxor.u32 2147483648, %v213_v15  ;;  %v377_v22 = vsel %vm375_vm0, %v222_v16, %v213_v15  ;;  %v223_v24 = vsel %vm221_vm4, %v222_v16, %v213_v15  ;;  %493 = vmatpush.msra.mxu2 %v458_v44 }
  0xe0   :  { %v374_v21 = vsel %vm372_vm15, %v205_v12, %v219_v17  ;;  %v220_v23 = vsel %vm218_vm3, %v205_v12, %v219_v17 }
  0xe1   :  { %v378_v25 = vsel %vm371_vm14, %v374_v21, %v377_v22  ;;  %v224_v26 = vsel %vm217_vm2, %v220_v23, %v223_v24 }
  0xe2   :  { %v379_v27 = vsel %vm214_vm5, nan, %v378_v25  ;;  %v225_v28 = vsel %vm214_vm5, nan, %v224_v26 }
  0xe3   :  { %523 = vmatmul.msk.f32.vlgmr.msra.gmra.mxu0 %vm384_vm1, %v379_v27  ;;  %524 = vmatmul.msk.f32.vlgmr.msra.gmra.mxu1 %vm384_vm1, %v225_v28 }
 0x160   :  { %v405_v41 = vpop.f32.mrf.mxu0  ;;  %v428_v42 = vpop.f32.mrf.mxu1 }
 0x161   :  { %v429_v18 = vadd.f32 %v428_v42, %v405_v41 }
 0x163   :  { %v435_v45 = vadd.f32 %v540_v40, %v429_v18 }
 0x165   :  { %v525_v46 = vmul.f32 -1.442695, %v435_v45 }
 0x167   :  { %542 = vpow2.f32 %v525_v46 }
 0x16d   :  { %v543_v47 = vpop.eup %542 }
 0x16e   :  { %v439_v48 = vadd.f32 1.0, %v543_v47 }
 0x170   :  { %544 = vrcp.f32 %v439_v48  ;;  %v451_v51 = vand.u32 2147483648, %v439_v48  ;;  %v449_v53 = vand.u32 2147483647, %v439_v48  ;;  %vm445_vm7 = vweird.f32 %v439_v48 }
 0x172   :  { %v452_v55 = vor.u32 1.1754944e-38, %v451_v51  ;;  %vm450_vm9 = vcmp.eq.f32.partialorder %v449_v53, 8.507059e+37 }
 0x176   :  { %v545_v36 = vpop.eup %544 }
 0x177   :  { %v441_v49 = vmul.f32 %v545_v36, %v439_v48  ;;  %vm446_vm6 = vweird.f32 %v545_v36 }
 0x178   :  { %vm447_vm8 = vmor %vm445_vm7, %vm446_vm6 }
 0x179   :  { %v442_v50 = vsub.f32 1.0, %v441_v49 }
 0x17b   :  { %v443_v52 = vmul.f32 %v545_v36, %v442_v50 }
 0x17d   :  { %v444_v54 = vadd.f32 %v545_v36, %v443_v52 }
 0x17f   :  { %v448_v56 = vsel %vm447_vm8, %v545_v36, %v444_v54 }
 0x180   :  { %v453_v57 = vsel %vm450_vm9, %v452_v55, %v448_v56 }
 0x181   :  { %v455_v58 = vmul.f32 %v453_v57, %v435_v45 }
 0x183   :  { %494 = vmatmul.f32.vlgmr.msra.gmra.mxu2 %v455_v58 }
 0x206   :  { %v495_v60 = vpop.f32.mrf.mxu2 }
 0x207   :  { %v496_v61 = vadd.f32 %v541_v59, %v495_v60 }
 0x209   :  { %498 = vst [vmem:[#allocation8] sm:$0xff] %v496_v61 }
 0x20a   :  { %509 = dma.vmem_to_hbm [thread:$0]  %s505_s13, 128, %s507_s16, [#allocation5]  }
 0x20b   :  { %622 = dma.done.wait [#allocation5], 128  }
 0x20c   :  { %623 = vsyncadd [#allocation5], 4294967168 }
 0x20d   :  { %514 = vsyncpa [#allocation4], 1 }
 0x20e   :  { %515 = vsyncpa [#allocation7], 1 }
 0x20f   :  { %516 = vsyncpa [#allocation5], 1 }

</bundles_post_ra>
